<compile_context>
chip_gen: v7x
topology: tpu7x:2x2x1
jax: 0.10.0
libtpu: 0.0.40
codegen_flags: <defaults>
</compile_context>

<pallas_src>
import functools

import jax
import jax.numpy as jnp
import numpy as np
from jax import lax
from jax.experimental import pallas as pl
from jax.experimental.pallas import tpu as pltpu

LN_EPS = 1e-5
NUM_CORES = 2  # leading "parallel" grid axis (2 TCs on v7x; harmless elsewhere)


def _round_up(x, m):
    return ((x + m - 1) // m) * m


def scalar_output_kernel(
    x_ref,      # (9, tn, F)  f32   k = 3*row + col of the 3x3; nodes on sublanes
    batch_ref,  # (tn, 1)     i32   graph id per node (== G for padded rows)
    gamma_ref,  # (3, F)      f32   LayerNorm gamma, rows = [I, A, S] slices
    beta_ref,   # (3, F)      f32
    w1_ref,     # (3, F, H)   mxu   first MLP layer split per irrep block
    b1_ref,     # (1, H)      f32
    w2_ref,     # (H, T)      mxu
    b2_ref,     # (1, T)      f32
    out_ref,    # (1, G, T)   f32   per-core partial, accumulated across node tiles
    *,
    num_graphs,
    mxu_dtype,
):
    @pl.when(pl.program_id(1) == 0)
    def _():
        out_ref[...] = jnp.zeros_like(out_ref)

    X = x_ref[...]                                  # (9, tn, F)
    x00, x01, x02 = X[0], X[1], X[2]
    x10, x11, x12 = X[3], X[4], X[5]
    x20, x21, x22 = X[6], X[7], X[8]

    # --- irrep decomposition + per-irrep Frobenius norms -------------------
    t3 = (x00 + x11 + x22) * (1.0 / 3.0)
    # I = (trace/3) * Id  ->  ||I||^2 = 3 * (trace/3)^2
    i_norm = 3.0 * t3 * t3
    # A = 0.5 * (X - X^T)  ->  ||A||^2 = 2 * sum_{i<j} A_ij^2
    a01 = 0.5 * (x01 - x10)
    a02 = 0.5 * (x02 - x20)
    a12 = 0.5 * (x12 - x21)
    a_norm = 2.0 * (a01 * a01 + a02 * a02 + a12 * a12)
    # S = 0.5 * (X + X^T) - (trace/3) * Id
    s00 = x00 - t3
    s11 = x11 - t3
    s22 = x22 - t3
    s01 = 0.5 * (x01 + x10)
    s02 = 0.5 * (x02 + x20)
    s12 = 0.5 * (x12 + x21)
    s_norm = (s00 * s00 + s11 * s11 + s22 * s22
              + 2.0 * (s01 * s01 + s02 * s02 + s12 * s12))

    # --- LayerNorm over the virtual concat [I | A | S] (width 3F) ----------
    # computed from per-irrep partial sums; no lane-axis concat / relayout.
    F = i_norm.shape[-1]
    inv_3f = 1.0 / (3.0 * F)
    mean = (jnp.sum(i_norm, axis=-1, keepdims=True)
            + jnp.sum(a_norm, axis=-1, keepdims=True)
            + jnp.sum(s_norm, axis=-1, keepdims=True)) * inv_3f
    ci = i_norm - mean
    ca = a_norm - mean
    cs = s_norm - mean
    var = (jnp.sum(ci * ci, axis=-1, keepdims=True)
           + jnp.sum(ca * ca, axis=-1, keepdims=True)
           + jnp.sum(cs * cs, axis=-1, keepdims=True)) * inv_3f
    inv_std = lax.rsqrt(var + LN_EPS)
    g = gamma_ref[...]
    b = beta_ref[...]
    ni = ci * inv_std * g[0:1, :] + b[0:1, :]
    na = ca * inv_std * g[1:2, :] + b[1:2, :]
    ns = cs * inv_std * g[2:3, :] + b[2:3, :]

    # --- MLP: Linear -> SiLU -> Linear (w1 split into per-irrep blocks) ----
    h = (jnp.dot(ni.astype(mxu_dtype), w1_ref[0], preferred_element_type=jnp.float32)
         + jnp.dot(na.astype(mxu_dtype), w1_ref[1], preferred_element_type=jnp.float32)
         + jnp.dot(ns.astype(mxu_dtype), w1_ref[2], preferred_element_type=jnp.float32)
         + b1_ref[...])
    h = h * jax.nn.sigmoid(h)                       # SiLU
    node_out = jnp.dot(h.astype(mxu_dtype), w2_ref[...],
                       preferred_element_type=jnp.float32) + b2_ref[...]   # (tn, T)

    # --- scatter-sum over graphs via in-kernel one-hot matmul ---------------
    # padded rows carry batch id == num_graphs -> all-zero one-hot row.
    tn = node_out.shape[0]
    bids = batch_ref[...]                                          # (tn, 1) i32
    graph_iota = lax.broadcasted_iota(jnp.int32, (tn, num_graphs), 1)
    onehot = (bids == graph_iota).astype(mxu_dtype)                # (tn, G)
    contrib = lax.dot_general(
        onehot, node_out.astype(mxu_dtype),
        dimension_numbers=(((0,), (0,)), ((), ())),
        preferred_element_type=jnp.float32,
    )                                                              # (G, T)
    out_ref[...] += contrib[jnp.newaxis]


def scalar_output_forward(X_i, batch, num_graphs, params, *,
                          tile_n=256, mxu_dtype=jnp.float32):
    """X_i: [N, F, 3, 3] f32; batch: [N] int32 graph ids -> [num_graphs, T]."""
    N, F = X_i.shape[0], X_i.shape[1]
    gamma, beta, w1, b1, w2, b2 = params
    H = w1.shape[1]
    T = w2.shape[1]
    G = int(num_graphs)

    # Node-tile size is the dominant tuning knob (sweep 256-1024; re-derive
    # against 64 MiB VMEM on v7x). Shrink for tiny N so the 2-core split still
    # covers the data without large padding.
    tile_n = max(8, min(tile_n, _round_up(pl.cdiv(N, NUM_CORES), 8)))
    tiles_per_core = pl.cdiv(N, NUM_CORES * tile_n)
    n_pad = NUM_CORES * tiles_per_core * tile_n

    # layout: (9, N, F); k = 3*row + col; nodes on sublanes, features on lanes.
    x_k = jnp.transpose(X_i.astype(jnp.float32), (2, 3, 0, 1)).reshape(9, N, F)
    x_k = jnp.pad(x_k, ((0, 0), (0, n_pad - N), (0, 0)))
    # padded rows get an out-of-range graph id -> masked out of the scatter sum
    batch_p = jnp.pad(batch.astype(jnp.int32), (0, n_pad - N),
                      constant_values=G).reshape(n_pad, 1)

    gamma3 = gamma.reshape(3, F).astype(jnp.float32)
    beta3 = beta.reshape(3, F).astype(jnp.float32)
    w1_3 = w1.reshape(3, F, H).astype(mxu_dtype)
    w2_c = w2.astype(mxu_dtype)

    kernel = functools.partial(scalar_output_kernel,
                               num_graphs=G, mxu_dtype=mxu_dtype)

    nt = tiles_per_core
    partials = pl.pallas_call(
        kernel,
        out_shape=jax.ShapeDtypeStruct((NUM_CORES, G, T), jnp.float32),
        grid_spec=pltpu.PrefetchScalarGridSpec(
            num_scalar_prefetch=0,
            grid=(NUM_CORES, nt),
            in_specs=[
                pl.BlockSpec((9, tile_n, F), lambda c, i: (0, c * nt + i, 0)),
                pl.BlockSpec((tile_n, 1), lambda c, i: (c * nt + i, 0)),
                pl.BlockSpec((3, F), lambda c, i: (0, 0)),
                pl.BlockSpec((3, F), lambda c, i: (0, 0)),
                pl.BlockSpec((3, F, H), lambda c, i: (0, 0, 0)),
                pl.BlockSpec((1, H), lambda c, i: (0, 0)),
                pl.BlockSpec((H, T), lambda c, i: (0, 0)),
                pl.BlockSpec((1, T), lambda c, i: (0, 0)),
            ],
            out_specs=pl.BlockSpec((1, G, T), lambda c, i: (c, 0, 0)),
        ),
        compiler_params=pltpu.CompilerParams(
            dimension_semantics=("parallel", "arbitrary"),
            vmem_limit_bytes=48 * 1024 * 1024,
        ),
    )(x_k, batch_p, gamma3, beta3, w1_3,
      b1.astype(jnp.float32), w2_c, b2.astype(jnp.float32))

    # combine the per-core partial graph sums
    return jnp.sum(partials, axis=0)


def scalar_output_reference(X_i, batch, num_graphs, params):
    """Pure-JAX reference for validation."""
    gamma, beta, w1, b1, w2, b2 = params
    Xt = jnp.swapaxes(X_i, -1, -2)
    trace = jnp.trace(X_i, axis1=-2, axis2=-1)[..., None, None]
    eye = jnp.eye(3, dtype=X_i.dtype)
    I = (trace / 3.0) * eye
    A = 0.5 * (X_i - Xt)
    S = 0.5 * (X_i + Xt) - I
    tnorm = lambda t: jnp.sum(t * t, axis=(-2, -1))
    feats = jnp.concatenate([tnorm(I), tnorm(A), tnorm(S)], axis=-1)
    mean = jnp.mean(feats, axis=-1, keepdims=True)
    var = jnp.mean((feats - mean) ** 2, axis=-1, keepdims=True)
    normed = (feats - mean) / jnp.sqrt(var + LN_EPS) * gamma + beta
    h = normed @ w1 + b1
    h = h * jax.nn.sigmoid(h)
    node_out = h @ w2 + b2
    return jax.ops.segment_sum(node_out, batch, num_segments=num_graphs)


if __name__ == "__main__":
    # Small, module-consistent shapes; N deliberately not a multiple of the
    # node tile to exercise the padding/masking path.
    num_features = 8       # F
    mlp_hidden = 32        # single hidden layer
    num_tasks = 2          # T
    num_nodes = 13         # N
    num_graphs = 3         # G

    key = jax.random.PRNGKey(0)
    kx, kg, kb, kw1, kb1, kw2, kb2, kbatch = jax.random.split(key, 8)

    X_i = jax.random.normal(kx, (num_nodes, num_features, 3, 3), jnp.float32)
    batch = jnp.sort(
        jax.random.randint(kbatch, (num_nodes,), 0, num_graphs)).astype(jnp.int32)

    c_in = 3 * num_features
    params = (
        jax.random.normal(kg, (1, c_in), jnp.float32) * 0.1 + 1.0,   # LN gamma
        jax.random.normal(kb, (1, c_in), jnp.float32) * 0.1,         # LN beta
        jax.random.normal(kw1, (c_in, mlp_hidden), jnp.float32) / np.sqrt(c_in),
        jax.random.normal(kb1, (1, mlp_hidden), jnp.float32) * 0.01,
        jax.random.normal(kw2, (mlp_hidden, num_tasks), jnp.float32) / np.sqrt(mlp_hidden),
        jax.random.normal(kb2, (1, num_tasks), jnp.float32) * 0.01,
    )

    ref = jax.block_until_ready(
        scalar_output_reference(X_i, batch, num_graphs, params))

    # f32 MXU path (exact vs reference)
    out_f32 = jax.block_until_ready(
        scalar_output_forward(X_i, batch, num_graphs, params,
                              tile_n=256, mxu_dtype=jnp.float32))
    np.testing.assert_allclose(np.asarray(out_f32), np.asarray(ref),
                               rtol=1e-4, atol=1e-4)

    # bf16 MXU operands, f32 accumulation (looser tolerance)
    out_bf16 = jax.block_until_ready(
        scalar_output_forward(X_i, batch, num_graphs, params,
                              tile_n=256, mxu_dtype=jnp.bfloat16))
    np.testing.assert_allclose(np.asarray(out_bf16), np.asarray(ref),
                               rtol=5e-2, atol=5e-2)

    print("KERNEL_OK")
</pallas_src>

<mosaic_0001>
module attributes {stable_mosaic.version = 11 : i64} {
  func.func @scalar_output_kernel(%arg0: i32, %arg1: i32, %arg2: memref<9x8x8xf32, #tpu.memory_space<vmem>>, %arg3: memref<8x1xi32, #tpu.memory_space<vmem>>, %arg4: memref<3x8xf32, #tpu.memory_space<vmem>>, %arg5: memref<3x8xf32, #tpu.memory_space<vmem>>, %arg6: memref<3x8x32xf32, #tpu.memory_space<vmem>>, %arg7: memref<1x32xf32, #tpu.memory_space<vmem>>, %arg8: memref<32x2xf32, #tpu.memory_space<vmem>>, %arg9: memref<1x2xf32, #tpu.memory_space<vmem>>, %arg10: memref<1x3x2xf32, #tpu.memory_space<vmem>>) attributes {dimension_semantics = [#tpu.dimension_semantics<parallel>, #tpu.dimension_semantics<arbitrary>], iteration_bounds = array<i64: 2, 1>, scalar_prefetch = 0 : i64, scratch_operands = 0 : i64, tpu.core_type = #tpu.core_type<tc>, window_params = [{transform_indices = @transform_0, window_bounds = array<i64: 9, 8, 8>}, {transform_indices = @transform_1, window_bounds = array<i64: 8, 1>}, {pipeline_mode = #tpu.pipeline_mode<synchronous>, transform_indices = @transform_2, window_bounds = array<i64: 3, 8>}, {pipeline_mode = #tpu.pipeline_mode<synchronous>, transform_indices = @transform_3, window_bounds = array<i64: 3, 8>}, {pipeline_mode = #tpu.pipeline_mode<synchronous>, transform_indices = @transform_4, window_bounds = array<i64: 3, 8, 32>}, {pipeline_mode = #tpu.pipeline_mode<synchronous>, transform_indices = @transform_5, window_bounds = array<i64: 1, 32>}, {pipeline_mode = #tpu.pipeline_mode<synchronous>, transform_indices = @transform_6, window_bounds = array<i64: 32, 2>}, {pipeline_mode = #tpu.pipeline_mode<synchronous>, transform_indices = @transform_7, window_bounds = array<i64: 1, 2>}, {transform_indices = @transform_8, window_bounds = array<i64: 1, 3, 2>}]} {
    %c0_i32 = arith.constant 0 : i32
    %0 = arith.cmpi eq, %arg1, %c0_i32 : i32
    %1 = arith.extui %0 : i1 to i32
    %c0_i32_0 = arith.constant 0 : i32
    %2 = arith.cmpi ne, %1, %c0_i32_0 : i32
    scf.if %2 {
      %cst_52 = arith.constant 0.000000e+00 : f32
      %164 = vector.broadcast %cst_52 : f32 to vector<1x3x2xf32>
      %c0_53 = arith.constant 0 : index
      %c0_54 = arith.constant 0 : index
      %c0_55 = arith.constant 0 : index
      %165 = vector.load %arg10[%c0_53, %c0_54, %c0_55] : memref<1x3x2xf32, #tpu.memory_space<vmem>>, vector<1x3x2xf32>
      tpu.vector_store %arg10[%c0_53, %c0_54, %c0_55], %164 {strides = array<i32>} : memref<1x3x2xf32, #tpu.memory_space<vmem>>, vector<1x3x2xf32>,
    } else {
    }
    %c0 = arith.constant 0 : index
    %c0_1 = arith.constant 0 : index
    %c0_2 = arith.constant 0 : index
    %3 = vector.load %arg2[%c0, %c0_1, %c0_2] : memref<9x8x8xf32, #tpu.memory_space<vmem>>, vector<9x8x8xf32>
    %4 = vector.extract_strided_slice %3 {offsets = [0, 0, 0], sizes = [1, 8, 8], strides = [1, 1, 1]} : vector<9x8x8xf32> to vector<1x8x8xf32>
    %5 = vector.shape_cast %4 : vector<1x8x8xf32> to vector<8x8xf32>
    %6 = vector.extract_strided_slice %3 {offsets = [1, 0, 0], sizes = [1, 8, 8], strides = [1, 1, 1]} : vector<9x8x8xf32> to vector<1x8x8xf32>
    %7 = vector.shape_cast %6 : vector<1x8x8xf32> to vector<8x8xf32>
    %8 = vector.extract_strided_slice %3 {offsets = [2, 0, 0], sizes = [1, 8, 8], strides = [1, 1, 1]} : vector<9x8x8xf32> to vector<1x8x8xf32>
    %9 = vector.shape_cast %8 : vector<1x8x8xf32> to vector<8x8xf32>
    %10 = vector.extract_strided_slice %3 {offsets = [3, 0, 0], sizes = [1, 8, 8], strides = [1, 1, 1]} : vector<9x8x8xf32> to vector<1x8x8xf32>
    %11 = vector.shape_cast %10 : vector<1x8x8xf32> to vector<8x8xf32>
    %12 = vector.extract_strided_slice %3 {offsets = [4, 0, 0], sizes = [1, 8, 8], strides = [1, 1, 1]} : vector<9x8x8xf32> to vector<1x8x8xf32>
    %13 = vector.shape_cast %12 : vector<1x8x8xf32> to vector<8x8xf32>
    %14 = vector.extract_strided_slice %3 {offsets = [5, 0, 0], sizes = [1, 8, 8], strides = [1, 1, 1]} : vector<9x8x8xf32> to vector<1x8x8xf32>
    %15 = vector.shape_cast %14 : vector<1x8x8xf32> to vector<8x8xf32>
    %16 = vector.extract_strided_slice %3 {offsets = [6, 0, 0], sizes = [1, 8, 8], strides = [1, 1, 1]} : vector<9x8x8xf32> to vector<1x8x8xf32>
    %17 = vector.shape_cast %16 : vector<1x8x8xf32> to vector<8x8xf32>
    %18 = vector.extract_strided_slice %3 {offsets = [7, 0, 0], sizes = [1, 8, 8], strides = [1, 1, 1]} : vector<9x8x8xf32> to vector<1x8x8xf32>
    %19 = vector.shape_cast %18 : vector<1x8x8xf32> to vector<8x8xf32>
    %20 = vector.extract_strided_slice %3 {offsets = [8, 0, 0], sizes = [1, 8, 8], strides = [1, 1, 1]} : vector<9x8x8xf32> to vector<1x8x8xf32>
    %21 = vector.shape_cast %20 : vector<1x8x8xf32> to vector<8x8xf32>
    %22 = arith.addf %5, %13 : vector<8x8xf32>
    %23 = arith.addf %22, %21 : vector<8x8xf32>
    %cst = arith.constant 0.333333343 : f32
    %24 = vector.broadcast %cst : f32 to vector<8x8xf32>
    %25 = arith.mulf %23, %24 : vector<8x8xf32>
    %cst_3 = arith.constant 3.000000e+00 : f32
    %26 = vector.broadcast %cst_3 : f32 to vector<8x8xf32>
    %27 = arith.mulf %26, %25 : vector<8x8xf32>
    %28 = arith.mulf %27, %25 : vector<8x8xf32>
    %29 = arith.subf %7, %11 : vector<8x8xf32>
    %cst_4 = arith.constant 5.000000e-01 : f32
    %30 = vector.broadcast %cst_4 : f32 to vector<8x8xf32>
    %31 = arith.mulf %30, %29 : vector<8x8xf32>
    %32 = arith.subf %9, %17 : vector<8x8xf32>
    %cst_5 = arith.constant 5.000000e-01 : f32
    %33 = vector.broadcast %cst_5 : f32 to vector<8x8xf32>
    %34 = arith.mulf %33, %32 : vector<8x8xf32>
    %35 = arith.subf %15, %19 : vector<8x8xf32>
    %cst_6 = arith.constant 5.000000e-01 : f32
    %36 = vector.broadcast %cst_6 : f32 to vector<8x8xf32>
    %37 = arith.mulf %36, %35 : vector<8x8xf32>
    %38 = arith.mulf %31, %31 : vector<8x8xf32>
    %39 = arith.mulf %34, %34 : vector<8x8xf32>
    %40 = arith.addf %38, %39 : vector<8x8xf32>
    %41 = arith.mulf %37, %37 : vector<8x8xf32>
    %42 = arith.addf %40, %41 : vector<8x8xf32>
    %cst_7 = arith.constant 2.000000e+00 : f32
    %43 = vector.broadcast %cst_7 : f32 to vector<8x8xf32>
    %44 = arith.mulf %43, %42 : vector<8x8xf32>
    %45 = arith.subf %5, %25 : vector<8x8xf32>
    %46 = arith.subf %13, %25 : vector<8x8xf32>
    %47 = arith.subf %21, %25 : vector<8x8xf32>
    %48 = arith.addf %7, %11 : vector<8x8xf32>
    %cst_8 = arith.constant 5.000000e-01 : f32
    %49 = vector.broadcast %cst_8 : f32 to vector<8x8xf32>
    %50 = arith.mulf %49, %48 : vector<8x8xf32>
    %51 = arith.addf %9, %17 : vector<8x8xf32>
    %cst_9 = arith.constant 5.000000e-01 : f32
    %52 = vector.broadcast %cst_9 : f32 to vector<8x8xf32>
    %53 = arith.mulf %52, %51 : vector<8x8xf32>
    %54 = arith.addf %15, %19 : vector<8x8xf32>
    %cst_10 = arith.constant 5.000000e-01 : f32
    %55 = vector.broadcast %cst_10 : f32 to vector<8x8xf32>
    %56 = arith.mulf %55, %54 : vector<8x8xf32>
    %57 = arith.mulf %45, %45 : vector<8x8xf32>
    %58 = arith.mulf %46, %46 : vector<8x8xf32>
    %59 = arith.addf %57, %58 : vector<8x8xf32>
    %60 = arith.mulf %47, %47 : vector<8x8xf32>
    %61 = arith.addf %59, %60 : vector<8x8xf32>
    %62 = arith.mulf %50, %50 : vector<8x8xf32>
    %63 = arith.mulf %53, %53 : vector<8x8xf32>
    %64 = arith.addf %62, %63 : vector<8x8xf32>
    %65 = arith.mulf %56, %56 : vector<8x8xf32>
    %66 = arith.addf %64, %65 : vector<8x8xf32>
    %cst_11 = arith.constant 2.000000e+00 : f32
    %67 = vector.broadcast %cst_11 : f32 to vector<8x8xf32>
    %68 = arith.mulf %67, %66 : vector<8x8xf32>
    %69 = arith.addf %61, %68 : vector<8x8xf32>
    %cst_12 = arith.constant dense<0.000000e+00> : vector<8xf32>
    %70 = vector.multi_reduction <add>, %28, %cst_12 [1] : vector<8x8xf32> to vector<8xf32>
    %71 = vector.shape_cast %70 : vector<8xf32> to vector<8x1xf32>
    %cst_13 = arith.constant dense<0.000000e+00> : vector<8xf32>
    %72 = vector.multi_reduction <add>, %44, %cst_13 [1] : vector<8x8xf32> to vector<8xf32>
    %73 = vector.shape_cast %72 : vector<8xf32> to vector<8x1xf32>
    %74 = arith.addf %71, %73 : vector<8x1xf32>
    %cst_14 = arith.constant dense<0.000000e+00> : vector<8xf32>
    %75 = vector.multi_reduction <add>, %69, %cst_14 [1] : vector<8x8xf32> to vector<8xf32>
    %76 = vector.shape_cast %75 : vector<8xf32> to vector<8x1xf32>
    %77 = arith.addf %74, %76 : vector<8x1xf32>
    %cst_15 = arith.constant 0.0416666679 : f32
    %78 = vector.broadcast %cst_15 : f32 to vector<8x1xf32>
    %79 = arith.mulf %77, %78 : vector<8x1xf32>
    %80 = vector.broadcast %79 : vector<8x1xf32> to vector<8x8xf32>
    %81 = arith.subf %28, %80 : vector<8x8xf32>
    %82 = vector.broadcast %79 : vector<8x1xf32> to vector<8x8xf32>
    %83 = arith.subf %44, %82 : vector<8x8xf32>
    %84 = vector.broadcast %79 : vector<8x1xf32> to vector<8x8xf32>
    %85 = arith.subf %69, %84 : vector<8x8xf32>
    %86 = arith.mulf %81, %81 : vector<8x8xf32>
    %cst_16 = arith.constant dense<0.000000e+00> : vector<8xf32>
    %87 = vector.multi_reduction <add>, %86, %cst_16 [1] : vector<8x8xf32> to vector<8xf32>
    %88 = vector.shape_cast %87 : vector<8xf32> to vector<8x1xf32>
    %89 = arith.mulf %83, %83 : vector<8x8xf32>
    %cst_17 = arith.constant dense<0.000000e+00> : vector<8xf32>
    %90 = vector.multi_reduction <add>, %89, %cst_17 [1] : vector<8x8xf32> to vector<8xf32>
    %91 = vector.shape_cast %90 : vector<8xf32> to vector<8x1xf32>
    %92 = arith.addf %88, %91 : vector<8x1xf32>
    %93 = arith.mulf %85, %85 : vector<8x8xf32>
    %cst_18 = arith.constant dense<0.000000e+00> : vector<8xf32>
    %94 = vector.multi_reduction <add>, %93, %cst_18 [1] : vector<8x8xf32> to vector<8xf32>
    %95 = vector.shape_cast %94 : vector<8xf32> to vector<8x1xf32>
    %96 = arith.addf %92, %95 : vector<8x1xf32>
    %cst_19 = arith.constant 0.0416666679 : f32
    %97 = vector.broadcast %cst_19 : f32 to vector<8x1xf32>
    %98 = arith.mulf %96, %97 : vector<8x1xf32>
    %cst_20 = arith.constant 9.99999974E-6 : f32
    %99 = vector.broadcast %cst_20 : f32 to vector<8x1xf32>
    %100 = arith.addf %98, %99 : vector<8x1xf32>
    %101 = math.rsqrt %100 : vector<8x1xf32>
    %c0_21 = arith.constant 0 : index
    %c0_22 = arith.constant 0 : index
    %102 = vector.load %arg4[%c0_21, %c0_22] : memref<3x8xf32, #tpu.memory_space<vmem>>, vector<3x8xf32>
    %c0_23 = arith.constant 0 : index
    %c0_24 = arith.constant 0 : index
    %103 = vector.load %arg5[%c0_23, %c0_24] : memref<3x8xf32, #tpu.memory_space<vmem>>, vector<3x8xf32>
    %104 = vector.broadcast %101 : vector<8x1xf32> to vector<8x8xf32>
    %105 = arith.mulf %81, %104 : vector<8x8xf32>
    %106 = vector.extract_strided_slice %102 {offsets = [0, 0], sizes = [1, 8], strides = [1, 1]} : vector<3x8xf32> to vector<1x8xf32>
    %107 = vector.broadcast %106 : vector<1x8xf32> to vector<8x8xf32>
    %108 = arith.mulf %105, %107 : vector<8x8xf32>
    %109 = vector.extract_strided_slice %103 {offsets = [0, 0], sizes = [1, 8], strides = [1, 1]} : vector<3x8xf32> to vector<1x8xf32>
    %110 = vector.broadcast %109 : vector<1x8xf32> to vector<8x8xf32>
    %111 = arith.addf %108, %110 : vector<8x8xf32>
    %112 = vector.broadcast %101 : vector<8x1xf32> to vector<8x8xf32>
    %113 = arith.mulf %83, %112 : vector<8x8xf32>
    %114 = vector.extract_strided_slice %102 {offsets = [1, 0], sizes = [1, 8], strides = [1, 1]} : vector<3x8xf32> to vector<1x8xf32>
    %115 = vector.broadcast %114 : vector<1x8xf32> to vector<8x8xf32>
    %116 = arith.mulf %113, %115 : vector<8x8xf32>
    %117 = vector.extract_strided_slice %103 {offsets = [1, 0], sizes = [1, 8], strides = [1, 1]} : vector<3x8xf32> to vector<1x8xf32>
    %118 = vector.broadcast %117 : vector<1x8xf32> to vector<8x8xf32>
    %119 = arith.addf %116, %118 : vector<8x8xf32>
    %120 = vector.broadcast %101 : vector<8x1xf32> to vector<8x8xf32>
    %121 = arith.mulf %85, %120 : vector<8x8xf32>
    %122 = vector.extract_strided_slice %102 {offsets = [2, 0], sizes = [1, 8], strides = [1, 1]} : vector<3x8xf32> to vector<1x8xf32>
    %123 = vector.broadcast %122 : vector<1x8xf32> to vector<8x8xf32>
    %124 = arith.mulf %121, %123 : vector<8x8xf32>
    %125 = vector.extract_strided_slice %103 {offsets = [2, 0], sizes = [1, 8], strides = [1, 1]} : vector<3x8xf32> to vector<1x8xf32>
    %126 = vector.broadcast %125 : vector<1x8xf32> to vector<8x8xf32>
    %127 = arith.addf %124, %126 : vector<8x8xf32>
    %c0_25 = arith.constant 0 : index
    %c0_26 = arith.constant 0 : index
    %c0_27 = arith.constant 0 : index
    %128 = vector.load %arg6[%c0_25, %c0_26, %c0_27] : memref<3x8x32xf32, #tpu.memory_space<vmem>>, vector<1x8x32xf32>
    %129 = vector.shape_cast %128 : vector<1x8x32xf32> to vector<8x32xf32>
    %cst_28 = arith.constant dense<0.000000e+00> : vector<8x32xf32>
    %130 = tpu.matmul %111, %129, %cst_28 {dimension_numbers = #tpu.dot_dimension_numbers<[1], [0], [0], [1], [0, 0, 1, 1], [], []>} : vector<8x8xf32>, vector<8x32xf32>, vector<8x32xf32> -> vector<8x32xf32>
    %c1 = arith.constant 1 : index
    %c0_29 = arith.constant 0 : index
    %c0_30 = arith.constant 0 : index
    %131 = vector.load %arg6[%c1, %c0_29, %c0_30] : memref<3x8x32xf32, #tpu.memory_space<vmem>>, vector<1x8x32xf32>
    %132 = vector.shape_cast %131 : vector<1x8x32xf32> to vector<8x32xf32>
    %cst_31 = arith.constant dense<0.000000e+00> : vector<8x32xf32>
    %133 = tpu.matmul %119, %132, %cst_31 {dimension_numbers = #tpu.dot_dimension_numbers<[1], [0], [0], [1], [0, 0, 1, 1], [], []>} : vector<8x8xf32>, vector<8x32xf32>, vector<8x32xf32> -> vector<8x32xf32>
    %134 = arith.addf %130, %133 : vector<8x32xf32>
    %c2 = arith.constant 2 : index
    %c0_32 = arith.constant 0 : index
    %c0_33 = arith.constant 0 : index
    %135 = vector.load %arg6[%c2, %c0_32, %c0_33] : memref<3x8x32xf32, #tpu.memory_space<vmem>>, vector<1x8x32xf32>
    %136 = vector.shape_cast %135 : vector<1x8x32xf32> to vector<8x32xf32>
    %cst_34 = arith.constant dense<0.000000e+00> : vector<8x32xf32>
    %137 = tpu.matmul %127, %136, %cst_34 {dimension_numbers = #tpu.dot_dimension_numbers<[1], [0], [0], [1], [0, 0, 1, 1], [], []>} : vector<8x8xf32>, vector<8x32xf32>, vector<8x32xf32> -> vector<8x32xf32>
    %138 = arith.addf %134, %137 : vector<8x32xf32>
    %c0_35 = arith.constant 0 : index
    %c0_36 = arith.constant 0 : index
    %139 = vector.load %arg7[%c0_35, %c0_36] : memref<1x32xf32, #tpu.memory_space<vmem>>, vector<1x32xf32>
    %140 = vector.broadcast %139 : vector<1x32xf32> to vector<8x32xf32>
    %141 = arith.addf %138, %140 : vector<8x32xf32>
    %142 = arith.negf %141 : vector<8x32xf32>
    %143 = math.exp %142 : vector<8x32xf32>
    %cst_37 = arith.constant 1.000000e+00 : f32
    %144 = vector.broadcast %cst_37 : f32 to vector<8x32xf32>
    %145 = arith.addf %144, %143 : vector<8x32xf32>
    %146 = arith.divf %144, %145 : vector<8x32xf32>
    %147 = arith.mulf %141, %146 : vector<8x32xf32>
    %c0_38 = arith.constant 0 : index
    %c0_39 = arith.constant 0 : index
    %148 = vector.load %arg8[%c0_38, %c0_39] : memref<32x2xf32, #tpu.memory_space<vmem>>, vector<32x2xf32>
    %cst_40 = arith.constant dense<0.000000e+00> : vector<8x2xf32>
    %149 = tpu.matmul %147, %148, %cst_40 {dimension_numbers = #tpu.dot_dimension_numbers<[1], [0], [0], [1], [0, 0, 1, 1], [], []>} : vector<8x32xf32>, vector<32x2xf32>, vector<8x2xf32> -> vector<8x2xf32>
    %c0_41 = arith.constant 0 : index
    %c0_42 = arith.constant 0 : index
    %150 = vector.load %arg9[%c0_41, %c0_42] : memref<1x2xf32, #tpu.memory_space<vmem>>, vector<1x2xf32>
    %151 = vector.broadcast %150 : vector<1x2xf32> to vector<8x2xf32>
    %152 = arith.addf %149, %151 : vector<8x2xf32>
    %c0_43 = arith.constant 0 : index
    %c0_44 = arith.constant 0 : index
    %153 = vector.load %arg3[%c0_43, %c0_44] : memref<8x1xi32, #tpu.memory_space<vmem>>, vector<8x1xi32>
    %154 = tpu.iota {dimensions = array<i32: 1>} : vector<8x3xi32>
    %155 = vector.broadcast %153 : vector<8x1xi32> to vector<8x3xi32>
    %156 = arith.cmpi eq, %155, %154 : vector<8x3xi32>
    %157 = arith.extui %156 : vector<8x3xi1> to vector<8x3xi32>
    %158 = arith.sitofp %157 : vector<8x3xi32> to vector<8x3xf32>
    %cst_45 = arith.constant dense<0.000000e+00> : vector<3x2xf32>
    %159 = tpu.matmul %158, %152, %cst_45 {dimension_numbers = #tpu.dot_dimension_numbers<[0], [0], [1], [1], [0, 1, 1, 1], [], []>} : vector<8x3xf32>, vector<8x2xf32>, vector<3x2xf32> -> vector<3x2xf32>
    %c0_46 = arith.constant 0 : index
    %c0_47 = arith.constant 0 : index
    %c0_48 = arith.constant 0 : index
    %160 = vector.load %arg10[%c0_46, %c0_47, %c0_48] : memref<1x3x2xf32, #tpu.memory_space<vmem>>, vector<1x3x2xf32>
    %161 = vector.shape_cast %159 : vector<3x2xf32> to vector<1x3x2xf32>
    %162 = arith.addf %160, %161 : vector<1x3x2xf32>
    %c0_49 = arith.constant 0 : index
    %c0_50 = arith.constant 0 : index
    %c0_51 = arith.constant 0 : index
    %163 = vector.load %arg10[%c0_49, %c0_50, %c0_51] : memref<1x3x2xf32, #tpu.memory_space<vmem>>, vector<1x3x2xf32>
    tpu.vector_store %arg10[%c0_49, %c0_50, %c0_51], %162 {strides = array<i32>} : memref<1x3x2xf32, #tpu.memory_space<vmem>>, vector<1x3x2xf32>,
    return
  }
  func.func @transform_0(%arg0: i32, %arg1: i32) -> (i32, i32, i32) {
    %c1_i32 = arith.constant 1 : i32
    %0 = arith.muli %arg0, %c1_i32 : i32
    %1 = arith.addi %0, %arg1 : i32
    %c0_i32 = arith.constant 0 : i32
    %c0_i32_0 = arith.constant 0 : i32
    %c0_i32_1 = arith.constant 0 : i32
    return %c0_i32, %1, %c0_i32_0 : i32, i32, i32
  }
  func.func @transform_1(%arg0: i32, %arg1: i32) -> (i32, i32) {
    %c1_i32 = arith.constant 1 : i32
    %0 = arith.muli %arg0, %c1_i32 : i32
    %1 = arith.addi %0, %arg1 : i32
    %c0_i32 = arith.constant 0 : i32
    %c0_i32_0 = arith.constant 0 : i32
    return %1, %c0_i32 : i32, i32
  }
  func.func @transform_2(%arg0: i32, %arg1: i32) -> (i32, i32) {
    %c0_i32 = arith.constant 0 : i32
    %c0_i32_0 = arith.constant 0 : i32
    %c0_i32_1 = arith.constant 0 : i32
    return %c0_i32, %c0_i32_0 : i32, i32
  }
  func.func @transform_3(%arg0: i32, %arg1: i32) -> (i32, i32) {
    %c0_i32 = arith.constant 0 : i32
    %c0_i32_0 = arith.constant 0 : i32
    %c0_i32_1 = arith.constant 0 : i32
    return %c0_i32, %c0_i32_0 : i32, i32
  }
  func.func @transform_4(%arg0: i32, %arg1: i32) -> (i32, i32, i32) {
    %c0_i32 = arith.constant 0 : i32
    %c0_i32_0 = arith.constant 0 : i32
    %c0_i32_1 = arith.constant 0 : i32
    %c0_i32_2 = arith.constant 0 : i32
    return %c0_i32, %c0_i32_0, %c0_i32_1 : i32, i32, i32
  }
  func.func @transform_5(%arg0: i32, %arg1: i32) -> (i32, i32) {
    %c0_i32 = arith.constant 0 : i32
    %c0_i32_0 = arith.constant 0 : i32
    %c0_i32_1 = arith.constant 0 : i32
    return %c0_i32, %c0_i32_0 : i32, i32
  }
  func.func @transform_6(%arg0: i32, %arg1: i32) -> (i32, i32) {
    %c0_i32 = arith.constant 0 : i32
    %c0_i32_0 = arith.constant 0 : i32
    %c0_i32_1 = arith.constant 0 : i32
    return %c0_i32, %c0_i32_0 : i32, i32
  }
  func.func @transform_7(%arg0: i32, %arg1: i32) -> (i32, i32) {
    %c0_i32 = arith.constant 0 : i32
    %c0_i32_0 = arith.constant 0 : i32
    %c0_i32_1 = arith.constant 0 : i32
    return %c0_i32, %c0_i32_0 : i32, i32
  }
  func.func @transform_8(%arg0: i32, %arg1: i32) -> (i32, i32, i32) {
    %c0_i32 = arith.constant 0 : i32
    %c0_i32_0 = arith.constant 0 : i32
    %c0_i32_1 = arith.constant 0 : i32
    return %arg0, %c0_i32, %c0_i32_0 : i32, i32, i32
  }
}

</mosaic_0001>

<bundles_post_ra>
// kernel: tpu_custom_call.1
= control target key start
LH: loop header
LB: loop body
LE: loop exit
PB: predicated region body
PF: predicated region fallthrough
CT: control target
= control target key end

     0   :  { %s1267_s27 = smov 0   ;;  %s1269_s28 = smov 0   ;;  %s1399_s0 = inlined_call_operand.vmem [shape: f32[9,16,8], index: 0, kind: input, shape index: {}]   ;;  %s1400_s1 = inlined_call_operand.vmem [shape: s32[16,1], index: 1, kind: input, shape index: {}]   ;;  %s1401_s2 = inlined_call_operand.vmem [shape: f32[3,8], index: 2, kind: input, shape index: {}]   ;;  %s1402_s3 = inlined_call_operand.vmem [shape: f32[3,8], index: 3, kind: input, shape index: {}]   ;;  %s1403_s4 = inlined_call_operand.vmem [shape: f32[3,8,32], index: 4, kind: input, shape index: {}]   ;;  %s1404_s5 = inlined_call_operand.vmem [shape: f32[1,32], index: 5, kind: input, shape index: {}]   ;;  %s1405_s6 = inlined_call_operand.vmem [shape: f32[32,2], index: 6, kind: input, shape index: {}]   ;;  %s1406_s7 = inlined_call_operand.vmem [shape: f32[1,2], index: 7, kind: input, shape index: {}]   ;;  %s1407_s8 = inlined_call_operand.vmem [shape: f32[2,3,2], index: 8, kind: output, shape index: {}]  }
   0x1   :  { %s1271_s29 = smov 0   ;;  %s1273_s30 = smov 0  }
   0x2   :  { %s1275_s9 = smov 0  }
   0x3 LB: > { %s30_s10 = sadd.s32 1, %s1212_s30  ;;  %p46_p1 = scmp.ne.s32.totalorder %s1204_s28, %s1200_s27  ;;  %s1216_s9 = sphi %s1275_s9, %s18_s9   ;;  %s1212_s30 = sphi %s1273_s30, %s1411_s30   ;;  %s1208_s29 = sphi %s1271_s29, %s1410_s29   ;;  %s1204_s28 = sphi %s1269_s28, %s1409_s28   ;;  %s1200_s27 = sphi %s1267_s27, %s1408_s27  }
   0x4   : > { %p32_p0 = scmp.ge.s32.totalorder %s30_s10, 2  ;;  %p47_p2 = scmp.eq.s32.totalorder %s1216_s9, 0 }
   0x5   : > { %s39_s12 = sadd.s32 1, %s1204_s28  ;;  %p1057_p5 = scmp.ge.s32.totalorder %s1216_s9, 2 }
   0x6   : > { %s1413_s10 = smov (%p32_p0, %s30_s10), 0  ;;  %p48_p3 = por %p47_p2, %p46_p1 }
   0x7   : > { %s36_s11 = ssub.s32 %s1212_s30, %s1413_s10  ;;  %270 = sbr.rel (%p1057_p5) target bundleno = 23 (0x17), region = 40 }
   0x8   : > { %p37_p4 = scmp.eq.s32.totalorder %s36_s11, 0 }
   0xa   : > { %s1302_s13 = scalar_select %p37_p4, %s1204_s28, %s39_s12  }
   0xe   : > { %273 = sbr.rel (!%p48_p3) target bundleno = 23 (0x17), region = 44  ;;  %s275_s14 = sand.u32 (%p48_p3), 1, %s1204_s28  }
   0xf   : > { %s1058_s15 = sshll.u32 (%p48_p3), %s1212_s30, 3  ;;  %s1125_s16 = smul.u32 (%p48_p3), 72, %s275_s14 }
  0x10   : > { %s280_s19 = scalar_lea.vmem (%p48_p3), %s1399_s0, %s1058_s15 }
  0x11   : > { %v324_v0 = vld [vmem:[%s280_s19] sm:$0xff] (%p48_p3)  ;;  %v326_v1 = vld [vmem:[%s280_s19 + $0x10] sm:$0xff] (%p48_p3)  ;;  %s277_s20 = scalar_lea.vmem (%p48_p3), [#allocation2], %s1125_s16 }
  0x12   : > { %v328_v2 = vld [vmem:[%s280_s19 + $0x20] sm:$0xff] (%p48_p3)  ;;  %v330_v3 = vld [vmem:[%s280_s19 + $0x30] sm:$0xff] (%p48_p3)  ;;  %325 = vst [vmem:[%s277_s20] sm:$0xff] (%p48_p3), %v324_v0  ;;  %327 = vst [vmem:[%s277_s20 + $0x8] sm:$0xff] (%p48_p3), %v326_v1 }
  0x13   : > { %v332_v4 = vld [vmem:[%s280_s19 + $0x40] sm:$0xff] (%p48_p3)  ;;  %v334_v5 = vld [vmem:[%s280_s19 + $0x50] sm:$0xff] (%p48_p3)  ;;  %329 = vst [vmem:[%s277_s20 + $0x10] sm:$0xff] (%p48_p3), %v328_v2  ;;  %331 = vst [vmem:[%s277_s20 + $0x18] sm:$0xff] (%p48_p3), %v330_v3 }
  0x14   : > { %333 = vst [vmem:[%s277_s20 + $0x20] sm:$0xff] (%p48_p3), %v332_v4  ;;  %335 = vst [vmem:[%s277_s20 + $0x28] sm:$0xff] (%p48_p3), %v334_v5  ;;  %v336_v6 = vld [vmem:[%s280_s19 + $0x60] sm:$0xff] (%p48_p3)  ;;  %v338_v7 = vld [vmem:[%s280_s19 + $0x70] sm:$0xff] (%p48_p3) }
  0x15   : > { %v340_v8 = vld [vmem:[%s280_s19 + $0x80] sm:$0xff]  ;;  %337 = vst [vmem:[%s277_s20 + $0x30] sm:$0xff] %v336_v6  ;;  %339 = vst [vmem:[%s277_s20 + $0x38] sm:$0xff] %v338_v7 }
  0x16   : > { %341 = vst [vmem:[%s277_s20 + $0x40] sm:$0xff] %v340_v8 }
  0x17 PF: > { %p1059_p6 = scmp.ge.s32.totalorder %s1216_s9, 1  ;;  %p355_p7 = scmp.lt.s32.totalorder %s1216_s9, 3 }
  0x19   : > { %p356_p8 = pnand %p1059_p6, %p355_p7 }
  0x1a   : > { %s362_s21 = sand.u32 (!%p356_p8), 1, %s1200_s27   ;;  %vm463_vm0 = vcmask (!%p356_p8), 64512   ;;  %vm1219_vm1 = vmmov (!%p356_p8), 0   ;;  %p401_p9 = scmp.lt.s32.totalorder (!%p356_p8), %s1208_s29, 1  ;;  %vm782_vm3 = vcmask (!%p356_p8), 261120   ;;  %vm414_vm4 = vcmask (!%p356_p8), 10240  }
  0x1b   : > { %359 = sbr.rel (%p356_p8) target bundleno = 1048 (0x418), region = 86 }
  0x1c   : > { %s1126_s22 = smul.u32 (!%p356_p8), 72, %s362_s21 }
  0x1e   : > { %s364_s23 = scalar_lea.vmem (!%p356_p8), [#allocation2], %s1126_s22 }
  0x1f   : > { %v416_v9 = vld [vmem:[%s364_s23] sm:$0xff] (!%p356_p8)  ;;  %v417_v13 = vld [vmem:[%s364_s23 + $0x8] sm:$0xff] (!%p356_p8)  ;;  %v418_v14 = vld [vmem:[%s364_s23 + $0x10] sm:$0xff] (!%p356_p8) }
  0x20   : > { %v420_v10 = vld [vmem:[%s364_s23 + $0x20] sm:$0xff] (!%p356_p8)  ;;  %v419_v15 = vld [vmem:[%s364_s23 + $0x18] sm:$0xff] (!%p356_p8)  ;;  %v421_v16 = vld [vmem:[%s364_s23 + $0x28] sm:$0xff] (!%p356_p8) }
  0x21   : > { %v424_v11 = vld [vmem:[%s364_s23 + $0x40] sm:$0xff] (!%p356_p8)  ;;  %v425_v12 = vadd.f32 (!%p356_p8), %v420_v10, %v416_v9  ;;  %v422_v17 = vld [vmem:[%s364_s23 + $0x30] sm:$0xff] (!%p356_p8)  ;;  %v423_v18 = vld [vmem:[%s364_s23 + $0x38] sm:$0xff] (!%p356_p8)  ;;  %v430_v19 = vsub.f32 (!%p356_p8), %v417_v13, %v419_v15  ;;  %v445_v20 = vadd.f32 (!%p356_p8), %v419_v15, %v417_v13  ;;  %v1220_v13 = vmov (!%p356_p8), 0  }
  0x22   : > { %v432_v22 = vsub.f32 %v418_v14, %v422_v17  ;;  %v434_v23 = vsub.f32 %v421_v16, %v423_v18  ;;  %v447_v24 = vadd.f32 %v422_v17, %v418_v14  ;;  %v449_v27 = vadd.f32 %v423_v18, %v421_v16  ;;  %1171 = vset.pattern.permute.xlu0 %v1220_v13  ;;  %s1415_s29 = smov (!%p401_p9, %s1208_s29), 1 }
  0x23   : > { %v426_v21 = vadd.f32 %v425_v12, %v424_v11  ;;  %v431_v25 = vmul.f32 0.5, %v430_v19  ;;  %v446_v26 = vmul.f32 0.5, %v445_v20  ;;  %v1218_v12 = vmov 0.0   ;;  %s1060_s11 = sshll.u32 %s1415_s29, 3  ;;  %s1061_s16 = sshll.u32 %s1415_s29, 2 }
  0x24   : > { %v433_v29 = vmul.f32 0.5, %v432_v22  ;;  %v435_v30 = vmul.f32 0.5, %v434_v23  ;;  %v448_v31 = vmul.f32 0.5, %v447_v24  ;;  %v450_v33 = vmul.f32 0.5, %v449_v27  ;;  %1088 = vmatprep.subr.mxu0 %v1218_v12  ;;  %1093 = vmatprep.subr.mxu1 %v1218_v12  ;;  %s404_s15 = scalar_lea.vmem %s1400_s1, %s1060_s11  ;;  %s409_s19 = scalar_lea.vmem %s1407_s8, %s1061_s16 }
  0x25   : > { %v427_v28 = vmul.f32 0.33333334, %v426_v21  ;;  %v436_v32 = vmul.f32 %v431_v25, %v431_v25  ;;  %v456_v34 = vmul.f32 %v446_v26, %v446_v26  ;;  %1090 = vmatprep.mubr.msk.f32.mxu0 %vm1219_vm1, %v1218_v12  ;;  %1095 = vmatprep.mubr.msk.f32.mxu1 %vm1219_vm1, %v1218_v12  ;;  %v856_v14 = vld [vmem:[%s404_s15] sm:$0xff]  ;;  %v499_v21 = vlaneseq  ;;  %415 = vst.msk [vmem:[%s409_s19] sm:$0x7] %vm414_vm4, %v1218_v12 }
  0x26   : > { %v437_v36 = vmul.f32 %v433_v29, %v433_v29  ;;  %v439_v37 = vmul.f32 %v435_v30, %v435_v30  ;;  %v457_v41 = vmul.f32 %v448_v31, %v448_v31  ;;  %v459_v42 = vmul.f32 %v450_v33, %v450_v33  ;;  %v496_v26 = vld [vmem:[%s1401_s2] sm:$0x7] }
  0x27   : > { %v428_v35 = vmul.f32 3.0, %v427_v28  ;;  %v442_v38 = vsub.f32 %v416_v9, %v427_v28  ;;  %v443_v39 = vsub.f32 %v420_v10, %v427_v28  ;;  %v444_v40 = vsub.f32 %v424_v11, %v427_v28  ;;  %v1062_v10 = vld [vmem:[%s1403_s4 + $0x8] sm:$0xff]  ;;  %v531_v11 = vld [vmem:[%s1403_s4] sm:$0xff] }
  0x28   : > { %v438_v44 = vadd.f32 %v437_v36, %v436_v32  ;;  %v458_v48 = vadd.f32 %v457_v41, %v456_v34  ;;  %1089 = vmatpush3.msra.mxu0 %v1062_v10  ;;  %1094 = vmatpush3.msra.mxu1 %v531_v11  ;;  %v500_v23 = vshrl.u32 %v499_v21, 7 }
  0x29   : > { %v429_v43 = vmul.f32 %v428_v35, %v427_v28  ;;  %v451_v45 = vmul.f32 %v442_v38, %v442_v38  ;;  %v452_v46 = vmul.f32 %v443_v39, %v443_v39  ;;  %v454_v47 = vmul.f32 %v444_v40, %v444_v40  ;;  %1098 = vmatprep.subr.mxu0 %v1218_v12  ;;  %v497_v28 = vld [vmem:[%s1402_s3] sm:$0x7] }
  0x2a   : > { %v440_v50 = vadd.f32 %v439_v37, %v438_v44  ;;  %v460_v52 = vadd.f32 %v459_v42, %v458_v48  ;;  %v512_v24 = vsub.s32 1, %v500_v23  ;;  %v501_v25 = vsub.s32 0, %v500_v23  ;;  %v1065_v42 = vld [vmem:[%s1403_s4 + $0x10] sm:$0xff] }
  0x2b   : > { %v464_v49 = vsel %vm463_vm0, %v429_v43, 0.0  ;;  %v453_v51 = vadd.f32 %v452_v46, %v451_v45  ;;  %v523_v27 = vsub.s32 2, %v500_v23  ;;  %v771_v46 = vld [vmem:[%s1405_s6] sm:$0xff] }
  0x2c   : > { %465 = vadd.xlane.f32.xlu0 %v464_v49  ;;  %v441_v53 = vmul.f32 2.0, %v440_v50  ;;  %v461_v55 = vmul.f32 2.0, %v460_v52  ;;  %v513_v29 = vrot.slane %v496_v26, %v512_v24  ;;  %v502_v30 = vrot.slane %v496_v26, %v501_v25  ;;  %v773_v50 = vld [vmem:[%s1405_s6 + $0x10] sm:$0xff]  ;;  %v970_v13 = vld [vmem:[%s409_s19] sm:$0x7] }
  0x2d   : > { %v455_v54 = vadd.f32 %v454_v47, %v453_v51  ;;  %v518_v32 = vrot.slane %v497_v28, %v512_v24  ;;  %v524_v33 = vrot.slane %v496_v26, %v523_v27  ;;  %v507_v36 = vrot.slane %v497_v28, %v501_v25  ;;  %v772_v47 = vld [vmem:[%s1405_s6 + $0x8] sm:$0xff]  ;;  %v774_v51 = vld [vmem:[%s1405_s6 + $0x18] sm:$0xff] }
  0x2e   : > { %v467_v56 = vsel %vm463_vm0, %v441_v53, 0.0  ;;  %v529_v44 = vrot.slane %v497_v28, %v523_v27  ;;  %v1120_v48 = vpack.c.bf16 %v772_v47, %v771_v46  ;;  %v1221_v49 = vmov 0.0|0.0  }
  0x2f   : > { %v462_v57 = vadd.f32 %v461_v55, %v455_v54  ;;  %1119 = vmatprep.subr.bf16.mxu1 %v1221_v49  ;;  %v1123_v52 = vpack.c.bf16 %v774_v51, %v773_v50 }
  0x30   : > { %468 = vadd.xlane.f32.xlu0 %v467_v56 }
  0x31   : > { %v471_v58 = vsel %vm463_vm0, %v462_v57, 0.0 }
  0x32   : > { %472 = vadd.xlane.f32.xlu1 %v471_v58 }
  0xb9   : > { %v466_v59 = vpop.xlane.xlu0 %465 }
  0xbd   : > { %v469_v60 = vpop.xlane.xlu0 %468 }
  0xbe   : > { %v470_v61 = vadd.f32 %v469_v60, %v466_v59 }
  0xbf   : > { %v473_v62 = vpop.xlane.xlu1 %472 }
  0xc0   : > { %v474_v63 = vadd.f32 %v473_v62, %v470_v61  ;;  %v1067_v62 = vld [vmem:[%s1404_s5] ss:$0 sm:$0xff] }
  0xc2   : > { %v475_v0 = vmul.f32 0.041666668, %v474_v63 }
  0xc4   : > { %v477_v1 = vsub.f32 %v441_v53, %v475_v0  ;;  %v476_v2 = vsub.f32 %v429_v43, %v475_v0  ;;  %v478_v3 = vsub.f32 %v462_v57, %v475_v0  ;;  %v858_v53 = vand.u32 127, %v499_v21 }
  0xc6   : > { %v483_v4 = vmul.f32 %v477_v1, %v477_v1  ;;  %v479_v5 = vmul.f32 %v476_v2, %v476_v2  ;;  %v488_v8 = vmul.f32 %v478_v3, %v478_v3 }
  0xc8   : > { %v484_v6 = vsel %vm463_vm0, %v483_v4, 0.0  ;;  %v480_v7 = vsel %vm463_vm0, %v479_v5, 0.0  ;;  %v489_v9 = vsel %vm463_vm0, %v488_v8, 0.0 }
  0xc9   : > { %485 = vadd.xlane.f32.xlu0 %v484_v6  ;;  %481 = vadd.xlane.f32.xlu1 %v480_v7  ;;  %v1069_v7 = vld [vmem:[%s1406_s7] ss:$0 sm:$0xff] }
  0xcd   : > { %490 = vadd.xlane.f32.xlu1 %v489_v9 }
  0xdf   : > { %860 = vperm.xlu0 %1171, %v856_v14  }
 0x156   : > { %v486_v15 = vpop.xlane.xlu0 %485  ;;  %v482_v16 = vpop.xlane.xlu1 %481 }
 0x157   : > { %v487_v17 = vadd.f32 %v486_v15, %v482_v16 }
 0x15a   : > { %v491_v18 = vpop.xlane.xlu1 %490 }
 0x15b   : > { %v492_v19 = vadd.f32 %v491_v18, %v487_v17 }
 0x15d   : > { %v493_v20 = vmul.f32 0.041666668, %v492_v19 }
 0x15e   : > { %v861_v54 = vpop.permute.xlu0 %860 }
 0x15f   : > { %v494_v22 = vadd.f32 1e-05, %v493_v20  ;;  %vm862_vm2 = vcmp.eq.s32.totalorder %v861_v54, %v858_v53 }
 0x160   : > { %v1071_v55 = vsel %vm862_vm2, 1.0, %v1218_v12 }
 0x161   : > { %1172 = vrsqrt.f32 %v494_v22  ;;  %865 = vxpose.xlu1.b32.start.end [1/1] (short) (narrow) %v1071_v55, 8 }
 0x16b   : > { %v1173_v31 = vpop.eup %1172 }
 0x16c   : > { %v509_v34 = vmul.f32 %v1173_v31, %v477_v1  ;;  %v498_v35 = vmul.f32 %v1173_v31, %v476_v2  ;;  %v520_v37 = vmul.f32 %v1173_v31, %v478_v3 }
 0x16e   : > { %v514_v38 = vmul.f32 %v513_v29, %v509_v34  ;;  %v503_v39 = vmul.f32 %v502_v30, %v498_v35  ;;  %v525_v43 = vmul.f32 %v524_v33, %v520_v37 }
 0x170   : > { %v519_v40 = vadd.f32 %v518_v32, %v514_v38  ;;  %v508_v41 = vadd.f32 %v507_v36, %v503_v39  ;;  %v530_v45 = vadd.f32 %v529_v44, %v525_v43 }
 0x172   : > { %1091 = vmatmul.mubr.msk.f32.vlgmr.msra.gmra.mrb[0].mxu0 %vm463_vm0, %v519_v40  ;;  %1096 = vmatmul.mubr.msk.f32.vlgmr.msra.gmra.mrb[0].mxu1 %vm463_vm0, %v508_v41 }
 0x173   : > { %1099 = vmatpush3.msra.mxu0 %v1065_v42  ;;  %1100 = vmatprep.mubr.msk.f32.mxu0 %vm1219_vm1, %v1218_v12 }
 0x174   : > { %1111 = vmatprep.mubr.msk.f32.mxu1 %vm1219_vm1, %v1218_v12  ;;  %1114 = vmatprep.subr.mxu0 %v1218_v12 }
 0x175   : > { %1121 = vmatpush3.bf16.msra.mxu1 %v1120_v48 }
 0x176   : > { %1101 = vmatmul.mubr.msk.f32.vlgmr.msra.gmra.mrb[2].mxu0 %vm463_vm0, %v530_v45  ;;  %1122 = vmatprep.subr.bf16.mxu1 %v1221_v49 }
 0x177   : > { %1116 = vmatprep.mubr.msk.f32.mxu0 %vm1219_vm1, %v1218_v12 }
 0x179   : > { %1124 = vmatpush3.bf16.msra.mxu1 %v1123_v52 }
 0x1e1   : > { %v881_v11 = vpop.trf.xlu1 }
 0x245   : > { %v603_v56 = vpop.f32.mrb[0].mxu0  ;;  %v676_v57 = vpop.f32.mrb[0].mxu1 }
 0x246   : > { %v677_v58 = vadd.f32 %v676_v57, %v603_v56  ;;  %v1092_v59 = vpop.f32.mrb[1].mxu0  ;;  %v1097_v60 = vpop.f32.mrb[1].mxu1 }
 0x249   : > { %v751_v61 = vpop.f32.mrb[2].mxu0 }
 0x24a   : > { %v755_v63 = vadd.f32 %v751_v61, %v677_v58  ;;  %v1102_v0 = vpop.f32.mrb[3].mxu0 }
 0x24c   : > { %v763_v1 = vadd.f32 %v1067_v62, %v755_v63 }
 0x24e   : > { %v1068_v2 = vmul.f32 -1.442695, %v763_v1 }
 0x250   : > { %1174 = vpow2.f32 %v1068_v2 }
 0x25a   : > { %v1175_v3 = vpop.eup %1174 }
 0x25b   : > { %v767_v4 = vadd.f32 1.0, %v1175_v3 }
 0x25d   : > { %1176 = vrcp.f32 %v767_v4 }
 0x267   : > { %v1177_v5 = vpop.eup %1176 }
 0x268   : > { %v770_v6 = vmul.f32 %v1177_v5, %v763_v1 }
 0x26a   : > { %1112 = vmatmul.mubr.msk.f32.vlgmr.msra.gmra.mrb[2].mxu1 %vm782_vm3, %v770_v6 }
 0x33d   : > { %v852_v8 = vpop.f32.mrb[2].mxu1 }
 0x33e   : > { %v853_v9 = vadd.f32 %v1069_v7, %v852_v8  ;;  %v1113_v10 = vpop.f32.mrb[3].mxu1 }
 0x340   : > { %1115 = vmatpush3.msra.mxu0 %v853_v9 }
 0x341   : > { %1117 = vmatmul.mubr.msk.f32.vlgmr.msra.gmra.mrb[4].mxu0 %vm463_vm0, %v881_v11 }
 0x414   : > { %v966_v14 = vpop.f32.mrb[4].mxu0 }
 0x415   : > { %v971_v15 = vadd.f32 %v970_v13, %v966_v14  ;;  %v1118_v16 = vpop.f32.mrb[5].mxu0 }
 0x417   : > { %973 = vst.msk [vmem:[%s409_s19] sm:$0x7] %vm414_vm4, %v971_v15 }
 0x418 PF: > { %s18_s9 = sadd.s32 1, %s1216_s9   ;;  %s1408_s27 = smov %s1204_s28 }
 0x419   : > { %p15_p10 = scmp.ge.s32.totalorder %s18_s9, 4   ;;  %s1409_s28 = smov %s1302_s13 }
 0x41a   : > { %s1410_s29 = smov %s1212_s30  ;;  %s1411_s30 = smov %s1413_s10 }
 0x41b   :  { %17 = sbr.rel (!%p15_p10) target bundleno = 3 (0x3), region = 134 }

</bundles_post_ra>
